<compile_context>
chip_gen: v7x
topology: tpu7x:2x2x1
jax: 0.10.0
libtpu: 0.0.40
codegen_flags: <defaults>
</compile_context>

<pallas_src>
import functools

import jax
import jax.numpy as jnp
from jax.experimental import pallas as pl
from jax.experimental.pallas import tpu as pltpu


# -----------------------------------------------------------------------------
# Sizing helpers
# -----------------------------------------------------------------------------
def _vmem_capacity_bytes():
    try:
        info = pltpu.get_tpu_info()
        for name in ("vmem_capacity_bytes", "vmem_bytes", "vmem_capacity"):
            v = getattr(info, name, None)
            if v:
                return int(v)
    except Exception:
        pass
    return 128 * 1024 * 1024


def _choose_q_block(q):
    """Quaternion groups per kernel block.

    Whole Q when 4Q <= 128 (MXU-friendly gram, no in-kernel relayout), else a
    multiple-of-8 divisor so the (4, qb, T) -> (4*qb, T) merge is layout-free.
    """
    if 4 * q <= 128:
        return q
    for qb in (32, 24, 16, 8):
        if q % qb == 0:
            return qb
    # TODO(synk): Q > 32 with no multiple-of-8 divisor falls back to a single
    # (possibly large) gram block; acceptable for realistic channel counts.
    return q


def _choose_hw_tile(hw, row_bytes, budget):
    """Return (lane tile, num tiles): largest multiple-of-128 tile in budget."""
    max_lanes = max(128, (budget // max(row_bytes, 1)) // 128 * 128)
    if hw <= max_lanes:
        return hw, 1
    # Prefer an exact divisor near the budget (no remainder masking needed).
    t = max_lanes
    while t >= max(128, max_lanes // 2):
        if hw % t == 0:
            return t, hw // t
        t -= 128
    return max_lanes, -(-hw // max_lanes)


# -----------------------------------------------------------------------------
# Pass 1: streaming statistics.
#   tile (c4, rows, T) -> accumulate gram (R, R) on the MXU and row sums (R, 1)
#   where R = c4 * rows = 4 * qb.  Per-group 4x4 blocks extracted in epilogue.
# -----------------------------------------------------------------------------
def _stats_kernel(x_ref, gram_ref, sum_ref, *, n_inner, thw, hw, mask, precision):
    t = pl.program_id(3)

    @pl.when(t == 0)
    def _init():
        gram_ref[...] = jnp.zeros_like(gram_ref)
        sum_ref[...] = jnp.zeros_like(sum_ref)

    xt = x_ref[...]                                  # (c4, rows, thw), native dtype
    c4, rows, tw = xt.shape
    x2 = xt.reshape(c4 * rows, tw)                   # free: c4==1 or rows % 8 == 0

    if mask:  # masked remainder lane-tile (H*W not a multiple of thw)
        start = (pl.program_id(2) * n_inner + t) * thw
        lane = jax.lax.broadcasted_iota(jnp.int32, x2.shape, 1) + start
        x2 = jnp.where(lane < hw, x2, jnp.zeros_like(x2))

    # All 10 second moments in one MXU gram per tile (VPU stays ~idle).
    gram_ref[...] += jax.lax.dot_general(
        x2, x2, (((1,), (1,)), ((), ())),
        preferred_element_type=jnp.float32, precision=precision)
    # First moments: one lane reduction (upcast is a no-op for f32 inputs).
    sum_ref[...] += jnp.sum(x2.astype(jnp.float32), axis=-1, keepdims=True)


# -----------------------------------------------------------------------------
# Pass 2: fused apply.  out = M @ x + beta_eff  (M = block-diagonal Gamma @ W,
# mean subtraction folded into beta_eff) -- one MXU matmul per streamed tile.
# -----------------------------------------------------------------------------
def _apply_kernel(x_ref, m_ref, beta_ref, o_ref, *, precision):
    g = pl.program_id(1)
    xt = x_ref[...]                                  # (c4, rows, thw)
    c4, rows, tw = xt.shape
    m = m_ref[g]                                     # (R, R), resident in VMEM
    x2 = xt.reshape(c4 * rows, tw).astype(m.dtype)   # no-op for f32 / bf16 inputs
    y = jax.lax.dot_general(
        m, x2, (((1,), (0,)), ((), ())),
        preferred_element_type=jnp.float32, precision=precision)
    y = y + beta_ref[g]                              # (R, 1) broadcast over lanes
    o_ref[...] = y.reshape(c4, rows, tw).astype(o_ref.dtype)


# -----------------------------------------------------------------------------
# Tiny O(Q) epilogue: gram -> covariance -> whitening -> fold Gamma & centering.
# -----------------------------------------------------------------------------
def _fold_params(gram_parts, sum_parts, gammas, bias, count, epsilon):
    n_qb, r = gram_parts.shape[1], gram_parts.shape[-1]
    r4 = r // 4
    q = n_qb * r4
    inv = jnp.float32(1.0 / count)

    gram = jnp.sum(gram_parts, axis=(0, 2))                   # (n_qb, R, R)
    sums = jnp.sum(sum_parts, axis=(0, 2))[..., 0]            # (n_qb, R)

    # Extract per-group 4x4 second-moment blocks from the gram.
    gram5 = gram.reshape(n_qb, 4, r4, 4, r4)
    exy = jnp.diagonal(gram5, axis1=2, axis2=4)               # (n_qb, 4, 4, r4)
    exy = jnp.transpose(exy, (1, 2, 0, 3)).reshape(4, 4, q) * inv
    mu = jnp.transpose(sums.reshape(n_qb, 4, r4), (1, 0, 2)).reshape(4, q) * inv

    V = exy - mu[:, None, :] * mu[None, :, :]                 # (4, 4, Q)
    eye4 = jnp.eye(4, dtype=V.dtype)[:, :, None]
    # Clamp the diagonal at 0 before +epsilon: guards the sqrt chain against
    # catastrophic cancellation of the single-pass E[x^2]-E[x]^2 estimate.
    V = jnp.where(eye4 > 0, jnp.maximum(V, 0.0) + epsilon, V)

    Vrr, Vri, Vrj, Vrk = V[0, 0], V[0, 1], V[0, 2], V[0, 3]
    Vii, Vij, Vik = V[1, 1], V[1, 2], V[1, 3]
    Vjj, Vjk = V[2, 2], V[2, 3]
    Vkk = V[3, 3]

    # Cholesky-style whitening (matches quaternion_standardization).
    Wrr = jnp.sqrt(Vrr)
    Wri = Vri / Wrr
    Wii = jnp.sqrt(Vii - Wri * Wri)
    Wrj = Vrj / Wrr
    Wij = (Vij - Wri * Wrj) / Wii
    Wjj = jnp.sqrt(Vjj - (Wij * Wij + Wrj * Wrj))
    Wrk = Vrk / Wrr
    Wik = (Vik - Wri * Wrk) / Wii
    Wjk = (Vjk - (Wij * Wik + Wrj * Wrk)) / Wjj
    Wkk = jnp.sqrt(Vkk - (Wjk * Wjk + Wik * Wik + Wrk * Wrk))

    Wm = jnp.stack([
        jnp.stack([Wrr, Wri, Wrj, Wrk]),
        jnp.stack([Wri, Wii, Wij, Wik]),
        jnp.stack([Wrj, Wij, Wjj, Wjk]),
        jnp.stack([Wrk, Wik, Wjk, Wkk]),
    ])                                                        # (4, 4, Q)

    grr, gri, grj, grk, gii, gij, gik, gjj, gjk, gkk = [
        gammas[t].astype(jnp.float32) for t in range(10)]
    G = jnp.stack([
        jnp.stack([grr, gri, grj, grk]),
        jnp.stack([gri, gii, gij, gik]),
        jnp.stack([grj, gij, gjj, gjk]),
        jnp.stack([grk, gik, gjk, gkk]),
    ])                                                        # (4, 4, Q)

    A = jnp.einsum('acq,cbq->abq', G, Wm)                     # Gamma @ W, (4,4,Q)
    beta = bias.astype(jnp.float32).reshape(4, q)
    beta_eff = beta - jnp.einsum('abq,bq->aq', A, mu)         # (4, Q)

    # Block-diagonal matrices for the fused pass-2 matmul:
    #   M[g, a*r4 + j, b*r4 + j] = A[a, b, g*r4 + j]
    A_g = jnp.transpose(A.reshape(4, 4, n_qb, r4), (2, 0, 1, 3))   # (n_qb,4,4,r4)
    eye_r = jnp.eye(r4, dtype=jnp.float32)
    M_all = jnp.einsum('gabj,jk->gajbk', A_g, eye_r).reshape(n_qb, r, r)
    beta_all = jnp.transpose(beta_eff.reshape(4, n_qb, r4),
                             (1, 0, 2)).reshape(n_qb, r, 1)
    return M_all, beta_all


# -----------------------------------------------------------------------------
# Wrapper
# -----------------------------------------------------------------------------
@functools.partial(jax.jit, static_argnames=("epsilon",))
def quaternion_batchnorm(x, gammas, bias, *, epsilon=1e-4):
    """Training-path forward of _BatchNorm.

    x:      (N, C, H, W), any float dtype
    gammas: (10, C//4) in order (rr, ri, rj, rk, ii, ij, ik, jj, jk, kk)
    bias:   (C,)
    """
    n, c, h, w = x.shape
    assert c % 4 == 0, "channel count must be a multiple of 4"
    q = c // 4
    hw = h * w
    count = n * hw

    qb = _choose_q_block(q)
    n_qb = q // qb
    c4 = 1 if n_qb == 1 else 4
    rows = 4 * q if n_qb == 1 else qb
    r = 4 * qb                                     # rows per merged 2-D tile

    # Free view (component-major channel rows), no transpose / extra HBM pass.
    x_v = x.reshape(n, c4, (4 * q) // c4, hw)

    itemsize = jnp.dtype(x.dtype).itemsize
    vmem_cap = _vmem_capacity_bytes()
    tile_budget = max(1 << 20, vmem_cap // 32)     # ~4 MiB (v5e/v6e), ~2 MiB (v7x)
    row_bytes = c4 * rows * max(itemsize, 4)
    thw, n_t = _choose_hw_tile(hw, row_bytes, tile_budget)
    mask = (hw % thw) != 0

    # Guarantee a >=2 parallel axis for v7x megacore even when N == 1.
    n_chunks = 1
    if n == 1 and n_qb == 1 and n_t >= 2 and n_t % 2 == 0:
        n_chunks = 2
    n_inner = n_t // n_chunks

    blk_bytes = c4 * rows * thw * max(itemsize, 4)
    vmem_limit = int(min(0.6 * vmem_cap,
                         max(32 * 2**20, 6 * blk_bytes + (8 << 20))))

    precision = (jax.lax.Precision.HIGHEST if x.dtype == jnp.float32
                 else jax.lax.Precision.DEFAULT)

    # ---- pass 1: per-(image, q-block, chunk) partial gram + row sums ----------
    stats = functools.partial(_stats_kernel, n_inner=n_inner, thw=thw, hw=hw,
                              mask=mask, precision=precision)
    gram_parts, sum_parts = pl.pallas_call(
        stats,
        out_shape=(jax.ShapeDtypeStruct((n, n_qb, n_chunks, r, r), jnp.float32),
                   jax.ShapeDtypeStruct((n, n_qb, n_chunks, r, 1), jnp.float32)),
        grid=(n, n_qb, n_chunks, n_inner),
        in_specs=[pl.BlockSpec(
            (None, c4, rows, thw),
            lambda i, g, ch, t: (i, 0, g, ch * n_inner + t))],
        out_specs=(pl.BlockSpec((None, None, None, r, r),
                                lambda i, g, ch, t: (i, g, ch, 0, 0)),
                   pl.BlockSpec((None, None, None, r, 1),
                                lambda i, g, ch, t: (i, g, ch, 0, 0))),
        compiler_params=pltpu.CompilerParams(
            dimension_semantics=("parallel", "parallel", "parallel", "arbitrary"),
            vmem_limit_bytes=vmem_limit),
    )(x_v)

    # ---- tiny O(Q) epilogue ----------------------------------------------------
    M_all, beta_all = _fold_params(gram_parts, sum_parts, gammas, bias,
                                   count, epsilon)
    if x.dtype == jnp.bfloat16:
        M_all = M_all.astype(jnp.bfloat16)         # native MXU operands (v6e/v7x)

    # ---- pass 2: streaming fused matmul apply (fully parallel grid) ------------
    apply_fn = functools.partial(_apply_kernel, precision=precision)
    out_v = pl.pallas_call(
        apply_fn,
        out_shape=jax.ShapeDtypeStruct(x_v.shape, x.dtype),
        grid=(n, n_qb, n_t),
        in_specs=[
            pl.BlockSpec((None, c4, rows, thw), lambda i, g, t: (i, 0, g, t)),
            pl.BlockSpec(memory_space=pltpu.MemorySpace.VMEM),  # M: un-pipelined
            pl.BlockSpec(memory_space=pltpu.MemorySpace.VMEM),  # beta: un-pipelined
        ],
        out_specs=pl.BlockSpec((None, c4, rows, thw), lambda i, g, t: (i, 0, g, t)),
        compiler_params=pltpu.CompilerParams(
            dimension_semantics=("parallel", "parallel", "parallel"),
            vmem_limit_bytes=vmem_limit),
    )(x_v, M_all, beta_all)

    return out_v.reshape(n, c, h, w)


# -----------------------------------------------------------------------------
# Pure-JAX port of the torch forward (training path), for verification.
# -----------------------------------------------------------------------------
def reference_forward(x, gammas, bias, *, epsilon=1e-4):
    n, c, h, w = x.shape
    q = c // 4
    red = (0, 2, 3)
    mu = jnp.mean(x, axis=red)
    xc = x - mu[None, :, None, None]
    r = xc[:, 0 * q:1 * q]
    i = xc[:, 1 * q:2 * q]
    j = xc[:, 2 * q:3 * q]
    k = xc[:, 3 * q:4 * q]
    Vrr = jnp.mean(r * r, axis=red) + epsilon
    Vii = jnp.mean(i * i, axis=red) + epsilon
    Vjj = jnp.mean(j * j, axis=red) + epsilon
    Vkk = jnp.mean(k * k, axis=red) + epsilon
    Vri = jnp.mean(r * i, axis=red)
    Vrj = jnp.mean(r * j, axis=red)
    Vrk = jnp.mean(r * k, axis=red)
    Vij = jnp.mean(i * j, axis=red)
    Vik = jnp.mean(i * k, axis=red)
    Vjk = jnp.mean(j * k, axis=red)

    Wrr = jnp.sqrt(Vrr)
    Wri = Vri / Wrr
    Wii = jnp.sqrt(Vii - Wri * Wri)
    Wrj = Vrj / Wrr
    Wij = (Vij - Wri * Wrj) / Wii
    Wjj = jnp.sqrt(Vjj - (Wij * Wij + Wrj * Wrj))
    Wrk = Vrk / Wrr
    Wik = (Vik - Wri * Wrk) / Wii
    Wjk = (Vjk - (Wij * Wik + Wrj * Wrk)) / Wjj
    Wkk = jnp.sqrt(Vkk - (Wjk * Wjk + Wik * Wik + Wrk * Wrk))

    def bc(v):  # (Q,) -> (1, Q, 1, 1)
        return v[None, :, None, None]

    sr = bc(Wrr) * r + bc(Wri) * i + bc(Wrj) * j + bc(Wrk) * k
    si = bc(Wri) * r + bc(Wii) * i + bc(Wij) * j + bc(Wik) * k
    sj = bc(Wrj) * r + bc(Wij) * i + bc(Wjj) * j + bc(Wjk) * k
    sk = bc(Wrk) * r + bc(Wik) * i + bc(Wjk) * j + bc(Wkk) * k

    grr, gri, grj, grk, gii, gij, gik, gjj, gjk, gkk = [gammas[t] for t in range(10)]
    b = bias[None, :, None, None]
    out_r = bc(grr) * sr + bc(gri) * si + bc(grj) * sj + bc(grk) * sk
    out_i = bc(gri) * sr + bc(gii) * si + bc(gij) * sj + bc(gik) * sk
    out_j = bc(grj) * sr + bc(gij) * si + bc(gjj) * sj + bc(gjk) * sk
    out_k = bc(grk) * sr + bc(gik) * si + bc(gjk) * sj + bc(gkk) * sk
    return jnp.concatenate([out_r, out_i, out_j, out_k], axis=1) + b


if __name__ == "__main__":
    # Small shapes consistent with the module: NCHW, num_features = 8 (Q = 2).
    N, C, H, W = 2, 8, 16, 16
    Q = C // 4
    key = jax.random.PRNGKey(0)
    kx, kg, kb = jax.random.split(key, 3)
    x = jax.random.normal(kx, (N, C, H, W), dtype=jnp.float32)

    # _BatchNorm.__init__ values (diag gammas = 1/sqrt(4), off-diag = 0, bias = 0)
    # plus a small deterministic perturbation so every term of the fused 4x4
    # apply (and the Gamma@W fold) is exercised by the correctness check.
    diag_mask = jnp.array([1, 0, 0, 0, 1, 0, 0, 1, 0, 1], jnp.float32)[:, None]
    gammas = 0.5 * diag_mask + 0.05 * jax.random.normal(kg, (10, Q), dtype=jnp.float32)
    bias = 0.1 * jax.random.normal(kb, (C,), dtype=jnp.float32)

    out = quaternion_batchnorm(x, gammas, bias, epsilon=1e-4)
    out = jax.block_until_ready(out)

    ref = reference_forward(x, gammas, bias, epsilon=1e-4)
    assert out.shape == (N, C, H, W)
    max_err = float(jnp.max(jnp.abs(out - ref)))
    assert jnp.allclose(out, ref, atol=1e-4, rtol=1e-4), max_err

    # TODO(synk): the torch eval-mode branch references nonexistent attrs
    # (self.running_mean / self.running_var / self.scale) and its moving-average
    # updates are computed but never stored; only the training-path output
    # (which is what forward() returns) is implemented.
    print("KERNEL_OK")
</pallas_src>

<mosaic_0001>
module attributes {stable_mosaic.version = 11 : i64} {
  func.func @_stats_kernel(%arg0: i32, %arg1: i32, %arg2: i32, %arg3: i32, %arg4: memref<1x1x8x256xf32, #tpu.memory_space<vmem>>, %arg5: memref<1x1x1x8x8xf32, #tpu.memory_space<vmem>>, %arg6: memref<1x1x1x8x1xf32, #tpu.memory_space<vmem>>) attributes {dimension_semantics = [#tpu.dimension_semantics<parallel>, #tpu.dimension_semantics<parallel>, #tpu.dimension_semantics<parallel>, #tpu.dimension_semantics<arbitrary>], iteration_bounds = array<i64: 2, 1, 1, 1>, scalar_prefetch = 0 : i64, scratch_operands = 0 : i64, tpu.core_type = #tpu.core_type<tc>, window_params = [{transform_indices = @transform_0, window_bounds = array<i64: 1, 1, 8, 256>}, {transform_indices = @transform_1, window_bounds = array<i64: 1, 1, 1, 8, 8>}, {transform_indices = @transform_2, window_bounds = array<i64: 1, 1, 1, 8, 1>}]} {
    %c0_i32 = arith.constant 0 : i32
    %0 = arith.cmpi eq, %arg3, %c0_i32 : i32
    %1 = arith.extui %0 : i1 to i32
    %c0_i32_0 = arith.constant 0 : i32
    %2 = arith.cmpi ne, %1, %c0_i32_0 : i32
    scf.if %2 {
      %cst_25 = arith.constant 0.000000e+00 : f32
      %21 = vector.broadcast %cst_25 : f32 to vector<8x8xf32>
      %c0_26 = arith.constant 0 : index
      %c0_27 = arith.constant 0 : index
      %c0_28 = arith.constant 0 : index
      %c0_29 = arith.constant 0 : index
      %c0_30 = arith.constant 0 : index
      %22 = vector.load %arg5[%c0_26, %c0_27, %c0_28, %c0_29, %c0_30] : memref<1x1x1x8x8xf32, #tpu.memory_space<vmem>>, vector<1x1x1x8x8xf32>
      %23 = vector.shape_cast %22 : vector<1x1x1x8x8xf32> to vector<8x8xf32>
      %24 = vector.shape_cast %21 : vector<8x8xf32> to vector<1x1x1x8x8xf32>
      tpu.vector_store %arg5[%c0_26, %c0_27, %c0_28, %c0_29, %c0_30], %24 {strides = array<i32>} : memref<1x1x1x8x8xf32, #tpu.memory_space<vmem>>, vector<1x1x1x8x8xf32>,
      %cst_31 = arith.constant 0.000000e+00 : f32
      %25 = vector.broadcast %cst_31 : f32 to vector<8x1xf32>
      %c0_32 = arith.constant 0 : index
      %c0_33 = arith.constant 0 : index
      %c0_34 = arith.constant 0 : index
      %c0_35 = arith.constant 0 : index
      %c0_36 = arith.constant 0 : index
      %26 = vector.load %arg6[%c0_32, %c0_33, %c0_34, %c0_35, %c0_36] : memref<1x1x1x8x1xf32, #tpu.memory_space<vmem>>, vector<1x1x1x8x1xf32>
      %27 = vector.shape_cast %26 : vector<1x1x1x8x1xf32> to vector<8x1xf32>
      %28 = vector.shape_cast %25 : vector<8x1xf32> to vector<1x1x1x8x1xf32>
      tpu.vector_store %arg6[%c0_32, %c0_33, %c0_34, %c0_35, %c0_36], %28 {strides = array<i32>} : memref<1x1x1x8x1xf32, #tpu.memory_space<vmem>>, vector<1x1x1x8x1xf32>,
    } else {
    }
    %c0 = arith.constant 0 : index
    %c0_1 = arith.constant 0 : index
    %c0_2 = arith.constant 0 : index
    %c0_3 = arith.constant 0 : index
    %3 = vector.load %arg4[%c0, %c0_1, %c0_2, %c0_3] : memref<1x1x8x256xf32, #tpu.memory_space<vmem>>, vector<1x1x8x256xf32>
    %4 = vector.shape_cast %3 : vector<1x1x8x256xf32> to vector<1x8x256xf32>
    %5 = vector.shape_cast %4 : vector<1x8x256xf32> to vector<8x256xf32>
    %c0_4 = arith.constant 0 : index
    %c0_5 = arith.constant 0 : index
    %c0_6 = arith.constant 0 : index
    %c0_7 = arith.constant 0 : index
    %c0_8 = arith.constant 0 : index
    %6 = vector.load %arg5[%c0_4, %c0_5, %c0_6, %c0_7, %c0_8] : memref<1x1x1x8x8xf32, #tpu.memory_space<vmem>>, vector<1x1x1x8x8xf32>
    %7 = vector.shape_cast %6 : vector<1x1x1x8x8xf32> to vector<8x8xf32>
    %cst = arith.constant dense<0.000000e+00> : vector<8x8xf32>
    %8 = tpu.matmul %5, %5, %cst {dimension_numbers = #tpu.dot_dimension_numbers<[1], [1], [0], [0], [0, 0, 1, 0], [], []>, precision = #tpu.contract_precision<fp32>} : vector<8x256xf32>, vector<8x256xf32>, vector<8x8xf32> -> vector<8x8xf32>
    %9 = arith.addf %7, %8 : vector<8x8xf32>
    %c0_9 = arith.constant 0 : index
    %c0_10 = arith.constant 0 : index
    %c0_11 = arith.constant 0 : index
    %c0_12 = arith.constant 0 : index
    %c0_13 = arith.constant 0 : index
    %10 = vector.load %arg5[%c0_9, %c0_10, %c0_11, %c0_12, %c0_13] : memref<1x1x1x8x8xf32, #tpu.memory_space<vmem>>, vector<1x1x1x8x8xf32>
    %11 = vector.shape_cast %10 : vector<1x1x1x8x8xf32> to vector<8x8xf32>
    %12 = vector.shape_cast %9 : vector<8x8xf32> to vector<1x1x1x8x8xf32>
    tpu.vector_store %arg5[%c0_9, %c0_10, %c0_11, %c0_12, %c0_13], %12 {strides = array<i32>} : memref<1x1x1x8x8xf32, #tpu.memory_space<vmem>>, vector<1x1x1x8x8xf32>,
    %c0_14 = arith.constant 0 : index
    %c0_15 = arith.constant 0 : index
    %c0_16 = arith.constant 0 : index
    %c0_17 = arith.constant 0 : index
    %c0_18 = arith.constant 0 : index
    %13 = vector.load %arg6[%c0_14, %c0_15, %c0_16, %c0_17, %c0_18] : memref<1x1x1x8x1xf32, #tpu.memory_space<vmem>>, vector<1x1x1x8x1xf32>
    %14 = vector.shape_cast %13 : vector<1x1x1x8x1xf32> to vector<8x1xf32>
    %cst_19 = arith.constant dense<0.000000e+00> : vector<8xf32>
    %15 = vector.multi_reduction <add>, %5, %cst_19 [1] : vector<8x256xf32> to vector<8xf32>
    %16 = vector.shape_cast %15 : vector<8xf32> to vector<8x1xf32>
    %17 = arith.addf %14, %16 : vector<8x1xf32>
    %c0_20 = arith.constant 0 : index
    %c0_21 = arith.constant 0 : index
    %c0_22 = arith.constant 0 : index
    %c0_23 = arith.constant 0 : index
    %c0_24 = arith.constant 0 : index
    %18 = vector.load %arg6[%c0_20, %c0_21, %c0_22, %c0_23, %c0_24] : memref<1x1x1x8x1xf32, #tpu.memory_space<vmem>>, vector<1x1x1x8x1xf32>
    %19 = vector.shape_cast %18 : vector<1x1x1x8x1xf32> to vector<8x1xf32>
    %20 = vector.shape_cast %17 : vector<8x1xf32> to vector<1x1x1x8x1xf32>
    tpu.vector_store %arg6[%c0_20, %c0_21, %c0_22, %c0_23, %c0_24], %20 {strides = array<i32>} : memref<1x1x1x8x1xf32, #tpu.memory_space<vmem>>, vector<1x1x1x8x1xf32>,
    return
  }
  func.func @transform_0(%arg0: i32, %arg1: i32, %arg2: i32, %arg3: i32) -> (i32, i32, i32, i32) {
    %c1_i32 = arith.constant 1 : i32
    %0 = arith.muli %arg2, %c1_i32 : i32
    %1 = arith.addi %0, %arg3 : i32
    %c0_i32 = arith.constant 0 : i32
    %c0_i32_0 = arith.constant 0 : i32
    return %arg0, %c0_i32, %arg1, %1 : i32, i32, i32, i32
  }
  func.func @transform_1(%arg0: i32, %arg1: i32, %arg2: i32, %arg3: i32) -> (i32, i32, i32, i32, i32) {
    %c0_i32 = arith.constant 0 : i32
    %c0_i32_0 = arith.constant 0 : i32
    %c0_i32_1 = arith.constant 0 : i32
    return %arg0, %arg1, %arg2, %c0_i32, %c0_i32_0 : i32, i32, i32, i32, i32
  }
  func.func @transform_2(%arg0: i32, %arg1: i32, %arg2: i32, %arg3: i32) -> (i32, i32, i32, i32, i32) {
    %c0_i32 = arith.constant 0 : i32
    %c0_i32_0 = arith.constant 0 : i32
    %c0_i32_1 = arith.constant 0 : i32
    return %arg0, %arg1, %arg2, %c0_i32, %c0_i32_0 : i32, i32, i32, i32, i32
  }
}

module attributes {stable_mosaic.version = 11 : i64} {
  func.func @_apply_kernel(%arg0: i32, %arg1: i32, %arg2: i32, %arg3: memref<1x1x8x256xf32, #tpu.memory_space<vmem>>, %arg4: memref<1x8x8xf32, #tpu.memory_space<vmem>>, %arg5: memref<1x8x1xf32, #tpu.memory_space<vmem>>, %arg6: memref<1x1x8x256xf32, #tpu.memory_space<vmem>>) attributes {dimension_semantics = [#tpu.dimension_semantics<parallel>, #tpu.dimension_semantics<parallel>, #tpu.dimension_semantics<parallel>], iteration_bounds = array<i64: 2, 1, 1>, scalar_prefetch = 0 : i64, scratch_operands = 0 : i64, tpu.core_type = #tpu.core_type<tc>, window_params = [{transform_indices = @transform_0, window_bounds = array<i64: 1, 1, 8, 256>}, {pipeline_mode = #tpu.pipeline_mode<synchronous>, transform_indices = @transform_1, window_bounds = array<i64: 1, 8, 8>}, {pipeline_mode = #tpu.pipeline_mode<synchronous>, transform_indices = @transform_2, window_bounds = array<i64: 1, 8, 1>}, {transform_indices = @transform_3, window_bounds = array<i64: 1, 1, 8, 256>}]} {
    %c0 = arith.constant 0 : index
    %c0_0 = arith.constant 0 : index
    %c0_1 = arith.constant 0 : index
    %c0_2 = arith.constant 0 : index
    %0 = vector.load %arg3[%c0, %c0_0, %c0_1, %c0_2] : memref<1x1x8x256xf32, #tpu.memory_space<vmem>>, vector<1x1x8x256xf32>
    %1 = vector.shape_cast %0 : vector<1x1x8x256xf32> to vector<1x8x256xf32>
    %2 = arith.index_cast %arg1 : i32 to index
    %c0_3 = arith.constant 0 : index
    %c0_4 = arith.constant 0 : index
    %3 = vector.load %arg4[%2, %c0_3, %c0_4] : memref<1x8x8xf32, #tpu.memory_space<vmem>>, vector<1x8x8xf32>
    %4 = vector.shape_cast %3 : vector<1x8x8xf32> to vector<8x8xf32>
    %5 = vector.shape_cast %1 : vector<1x8x256xf32> to vector<8x256xf32>
    %cst = arith.constant dense<0.000000e+00> : vector<8x256xf32>
    %6 = tpu.matmul %4, %5, %cst {dimension_numbers = #tpu.dot_dimension_numbers<[1], [0], [0], [1], [0, 0, 1, 1], [], []>, precision = #tpu.contract_precision<fp32>} : vector<8x8xf32>, vector<8x256xf32>, vector<8x256xf32> -> vector<8x256xf32>
    %7 = arith.index_cast %arg1 : i32 to index
    %c0_5 = arith.constant 0 : index
    %c0_6 = arith.constant 0 : index
    %8 = vector.load %arg5[%7, %c0_5, %c0_6] : memref<1x8x1xf32, #tpu.memory_space<vmem>>, vector<1x8x1xf32>
    %9 = vector.shape_cast %8 : vector<1x8x1xf32> to vector<8x1xf32>
    %10 = vector.broadcast %9 : vector<8x1xf32> to vector<8x256xf32>
    %11 = arith.addf %6, %10 : vector<8x256xf32>
    %12 = vector.shape_cast %11 : vector<8x256xf32> to vector<1x8x256xf32>
    %c0_7 = arith.constant 0 : index
    %c0_8 = arith.constant 0 : index
    %c0_9 = arith.constant 0 : index
    %c0_10 = arith.constant 0 : index
    %13 = vector.load %arg6[%c0_7, %c0_8, %c0_9, %c0_10] : memref<1x1x8x256xf32, #tpu.memory_space<vmem>>, vector<1x1x8x256xf32>
    %14 = vector.shape_cast %13 : vector<1x1x8x256xf32> to vector<1x8x256xf32>
    %15 = vector.shape_cast %12 : vector<1x8x256xf32> to vector<1x1x8x256xf32>
    tpu.vector_store %arg6[%c0_7, %c0_8, %c0_9, %c0_10], %15 {strides = array<i32>} : memref<1x1x8x256xf32, #tpu.memory_space<vmem>>, vector<1x1x8x256xf32>,
    return
  }
  func.func @transform_0(%arg0: i32, %arg1: i32, %arg2: i32) -> (i32, i32, i32, i32) {
    %c0_i32 = arith.constant 0 : i32
    %c0_i32_0 = arith.constant 0 : i32
    return %arg0, %c0_i32, %arg1, %arg2 : i32, i32, i32, i32
  }
  func.func @transform_1(%arg0: i32, %arg1: i32, %arg2: i32) -> (i32, i32, i32) {
    %c0_i32 = arith.constant 0 : i32
    %c0_i32_0 = arith.constant 0 : i32
    %c0_i32_1 = arith.constant 0 : i32
    %c0_i32_2 = arith.constant 0 : i32
    return %c0_i32, %c0_i32_0, %c0_i32_1 : i32, i32, i32
  }
  func.func @transform_2(%arg0: i32, %arg1: i32, %arg2: i32) -> (i32, i32, i32) {
    %c0_i32 = arith.constant 0 : i32
    %c0_i32_0 = arith.constant 0 : i32
    %c0_i32_1 = arith.constant 0 : i32
    %c0_i32_2 = arith.constant 0 : i32
    return %c0_i32, %c0_i32_0, %c0_i32_1 : i32, i32, i32
  }
  func.func @transform_3(%arg0: i32, %arg1: i32, %arg2: i32) -> (i32, i32, i32, i32) {
    %c0_i32 = arith.constant 0 : i32
    %c0_i32_0 = arith.constant 0 : i32
    return %arg0, %c0_i32, %arg1, %arg2 : i32, i32, i32, i32
  }
}

</mosaic_0001>

<bundles_post_ra>
// kernel: quaternion_batchnorm.2
= control target key start
LH: loop header
LB: loop body
LE: loop exit
PB: predicated region body
PF: predicated region fallthrough
CT: control target
= control target key end

     0   :  { %s968_s9 = smov 0   ;;  %s970_s10 = smov 0   ;;  %s1010_s0 = inlined_call_operand.vmem [shape: f32[2,1,8,256], index: 0, kind: input, shape index: {}]   ;;  %s1011_s1 = inlined_call_operand.vmem [shape: f32[2,1,1,8,8], index: 1, kind: output, shape index: {0}]   ;;  %s1012_s2 = inlined_call_operand.vmem [shape: f32[2,1,1,8,1], index: 2, kind: output, shape index: {1}]  }
   0x1   :  { %s972_s11 = smov 0  }
   0x2 LB: > { %s39_s12 = sadd.s32 1, %s946_s10  ;;  %p895_p0 = scmp.ge.s32.totalorder %s950_s11, 1  ;;  %s950_s11 = sphi %s972_s11, %s13_s11   ;;  %s946_s10 = sphi %s970_s10, %s1014_s10   ;;  %s942_s9 = sphi %s968_s9, %s1013_s9  }
   0x3   : > { %p41_p1 = scmp.ge.s32.totalorder %s39_s12, 2  ;;  %p166_p2 = scmp.lt.s32.totalorder %s950_s11, 3 }
   0x5   : > { %s1016_s12 = smov (%p41_p1, %s39_s12), 0  ;;  %p167_p3 = pnand %p895_p0, %p166_p2 }
   0x6   : > { %p214_p4 = scmp.lt.s32.totalorder (!%p167_p3), %s942_s9, 1  ;;  %vm252_vm0 = vcmask (!%p167_p3), 64512   ;;  %vm254_vm1 = vcmask (!%p167_p3), 7168   ;;  %v952_v13 = vmov (!%p167_p3), 0.0  }
   0x7   : > { %170 = sbr.rel (%p167_p3) target bundleno = 257 (0x101), region = 24 }
   0xe   : > { %s1018_s9 = smov (!%p214_p4, %s942_s9), 1 }
   0xf   : > { %s902_s13 = sshll.u32 %s1018_s9, 4  ;;  %s898_s17 = sshll.u32 %s1018_s9, 3 }
  0x10   : > { %s225_s16 = scalar_lea.vmem %s1010_s0, %s902_s13  ;;  %s237_s20 = scalar_lea.vmem %s1011_s1, %s898_s17 }
  0x11   : > { %v257_v0 = vld [vmem:[%s225_s16 + $0x8] sm:$0xff]  ;;  %v256_v1 = vld [vmem:[%s225_s16] sm:$0xff]  ;;  %s247_s23 = scalar_lea.vmem %s1012_s2, %s898_s17  ;;  %253 = vst.msk [vmem:[%s237_s20] sm:$0xff] %vm252_vm0, %v952_v13 }
  0x12   : > { %v259_v2 = vand.u32 4294901760, %v257_v0  ;;  %v261_v3 = vand.u32 4294901760, %v256_v1  ;;  %v735_v4 = vadd.f32 %v257_v0, %v256_v1  ;;  %255 = vst.msk [vmem:[%s247_s23] sm:$0xff] %vm254_vm1, %v952_v13 }
  0x14   : > { %260 = vmatprep.subr.mxu0 %v259_v2  ;;  %v326_v5 = vsub.f32 %v257_v0, %v259_v2  ;;  %v332_v6 = vsub.f32 %v256_v1, %v261_v3  ;;  %416 = vmatprep.mubr.f32.mxu1 %v259_v2 }
  0x15   : > { %262 = vmatpush1.xpose.msra.mxu0 %v261_v3  ;;  %736 = vadd.xlane.f32.xlu0 %v735_v4 }
  0x16   : > { %v327_v7 = vand.u32 4294901760, %v326_v5  ;;  %v333_v8 = vand.u32 4294901760, %v332_v6  ;;  %425 = vmatprep.subr.mxu0 %v326_v5 }
  0x18   : > { %v328_v9 = vsub.f32 %v326_v5, %v327_v7  ;;  %v334_v10 = vsub.f32 %v332_v6, %v333_v8  ;;  %v258_v31 = vld [vmem:[%s237_s20] sm:$0xff] }
  0x19   : > { %v734_v14 = vld [vmem:[%s247_s23] sm:$0xff] }
  0x1a   : > { %v329_v11 = vand.u32 4294901760, %v328_v9  ;;  %v335_v12 = vand.u32 4294901760, %v334_v10 }
  0x1c   : > { %346 = vmatprep.subr.mxu1 %v329_v11  ;;  %330 = vmatprep.mubr.f32.mxu0 %v329_v11 }
  0x1d   : > { %352 = vmatpush1.xpose.msra.mxu1 %v335_v12  ;;  %336 = vmatmul.mubr.f32.vlgmr.msra.gmra.mrb[0].mxu0 %v335_v12 }
  0x1e   : > { %428 = vmatpush1.xpose.msra.mxu0 %v332_v6  ;;  %502 = vmatprep.subr.mxu1 %v259_v2 }
  0x1f   : > { %493 = vmatprep.mubr.f32.mxu0 %v326_v5  ;;  %582 = vmatprep.subr.mxu0 %v327_v7 }
  0x20   : > { %418 = vmatmul.mubr.f32.vlgmr.msra.gmra.mrb[0].mxu1 %v261_v3 }
  0x21   : > { %504 = vmatpush1.xpose.msra.mxu1 %v261_v3  ;;  %496 = vmatmul.mubr.f32.vlgmr.msra.gmra.mrb[2].mxu0 %v332_v6 }
  0x22   : > { %570 = vmatprep.mubr.f32.mxu1 %v327_v7  ;;  %586 = vmatpush1.xpose.msra.mxu0 %v333_v8 }
  0x23   : > { %658 = vmatprep.subr.mxu1 %v259_v2  ;;  %650 = vmatprep.mubr.f32.mxu0 %v259_v2 }
  0x24   : > { %574 = vmatmul.mubr.f32.vlgmr.msra.gmra.mrb[2].mxu1 %v333_v8 }
  0x25   : > { %660 = vmatpush1.xpose.msra.mxu1 %v261_v3  ;;  %652 = vmatmul.mubr.f32.vlgmr.msra.gmra.mrb[4].mxu0 %v261_v3 }
  0x26   : > { %724 = vmatprep.mubr.f32.mxu1 %v259_v2 }
  0x28   : > { %726 = vmatmul.mubr.f32.vlgmr.msra.gmra.mrb[4].mxu1 %v261_v3 }
  0xa2   : > { %v737_v15 = vpop.xlane.xlu0 %736 }
  0xa3   : > { %v738_v16 = vadd.f32 %v737_v15, %v734_v14 }
  0xa5   : > { %740 = vst.msk [vmem:[%s247_s23] sm:$0xff] %vm254_vm1, %v738_v16 }
  0xf0   : > { %v337_v17 = vpop.f32.mrb[0].mxu0 }
  0xf1   : > { %v339_v18 = vpop.f32.mrb[1].mxu0 }
  0xf3   : > { %v419_v19 = vpop.f32.mrb[0].mxu1 }
  0xf4   : > { %v420_v20 = vadd.f32 %v419_v19, %v337_v17  ;;  %v421_v21 = vpop.f32.mrb[1].mxu1  ;;  %v497_v22 = vpop.f32.mrb[2].mxu0 }
  0xf5   : > { %v499_v23 = vpop.f32.mrb[3].mxu0 }
  0xf6   : > { %v498_v24 = vadd.f32 %v497_v22, %v420_v20 }
  0xf7   : > { %v575_v25 = vpop.f32.mrb[2].mxu1 }
  0xf8   : > { %v576_v26 = vadd.f32 %v575_v25, %v498_v24  ;;  %v577_v27 = vpop.f32.mrb[3].mxu1  ;;  %v653_v28 = vpop.f32.mrb[4].mxu0 }
  0xf9   : > { %v655_v29 = vpop.f32.mrb[5].mxu0 }
  0xfa   : > { %v654_v30 = vadd.f32 %v653_v28, %v576_v26 }
  0xfb   : > { %v727_v32 = vpop.f32.mrb[4].mxu1 }
  0xfc   : > { %v728_v33 = vadd.f32 %v727_v32, %v654_v30  ;;  %v729_v34 = vpop.f32.mrb[5].mxu1 }
  0xfe   : > { %v731_v35 = vadd.f32 %v728_v33, %v258_v31 }
 0x100   : > { %733 = vst.msk [vmem:[%s237_s20] sm:$0xff] %vm252_vm0, %v731_v35 }
 0x101 PF: > { %s13_s11 = sadd.s32 1, %s950_s11   ;;  %s1013_s9 = smov %s946_s10 }
 0x102   : > { %p10_p5 = scmp.ge.s32.totalorder %s13_s11, 4   ;;  %s1014_s10 = smov %s1016_s12 }
 0x104   :  { %12 = sbr.rel (!%p10_p5) target bundleno = 2 (0x2), region = 70 }

// kernel: quaternion_batchnorm.3
= control target key start
LH: loop header
LB: loop body
LE: loop exit
PB: predicated region body
PF: predicated region fallthrough
CT: control target
= control target key end

     0   :  { %s938_s12 = smov 0   ;;  %s940_s13 = smov 0   ;;  %s984_s0 = inlined_call_operand.vmem [shape: f32[2,1,8,256], index: 0, kind: input, shape index: {}]   ;;  %s985_s1 = inlined_call_operand.vmem [shape: f32[1,8,8], index: 1, kind: input, shape index: {}]   ;;  %s986_s2 = inlined_call_operand.vmem [shape: f32[1,8,1], index: 2, kind: input, shape index: {}]   ;;  %s987_s3 = inlined_call_operand.vmem [shape: f32[2,1,8,256], index: 3, kind: output, shape index: {}]  }
   0x1   :  { %s942_s14 = smov 0  }
   0x2 LB: > { %s32_s15 = sadd.s32 1, %s910_s13  ;;  %p844_p0 = scmp.ge.s32.totalorder %s914_s14, 1  ;;  %s914_s14 = sphi %s942_s14, %s13_s14   ;;  %s910_s13 = sphi %s940_s13, %s989_s13   ;;  %s906_s12 = sphi %s938_s12, %s988_s12  }
   0x3   : > { %p34_p1 = scmp.ge.s32.totalorder %s32_s15, 2  ;;  %p173_p2 = scmp.lt.s32.totalorder %s914_s14, 3 }
   0x5   : > { %s991_s15 = smov (%p34_p1, %s32_s15), 0  ;;  %p174_p3 = pnand %p844_p0, %p173_p2 }
   0x6   : > { %p214_p4 = scmp.lt.s32.totalorder (!%p174_p3), %s906_s12, 1  ;;  %v245_v0 = vld [vmem:[%s985_s1] sm:$0xff] (!%p174_p3)  ;;  %vm253_vm0 = vcmask (!%p174_p3), 64512   ;;  %v916_v2 = vmov (!%p174_p3), 0.0   ;;  %v917_v5 = vmov (!%p174_p3), 0  }
   0x7   : > { %177 = sbr.rel (%p174_p3) target bundleno = 257 (0x101), region = 32  ;;  %v247_v1 = vld [vmem:[%s986_s2] sm:$0xff] (!%p174_p3)  ;;  %560 = vmatprep.mubr.f32.mxu0 (!%p174_p3), %v916_v2  ;;  %323 = vmatprep.mubr.f32.mxu1 (!%p174_p3), %v916_v2  ;;  %v255_v3 = vsel (!%p174_p3), %vm253_vm0, %v245_v0, 0 }
   0x8   : > { %v324_v4 = vand.u32 (!%p174_p3), 4294901760, %v255_v3  ;;  %891 = vset.pattern.permute.xlu0 (!%p174_p3), %v917_v5 }
   0x9   : > { %250 = vperm.xlu0 (!%p174_p3), %891, %v247_v1  }
   0xa   : > { %v325_v6 = vsub.f32 (!%p174_p3), %v255_v3, %v324_v4 }
   0xc   : > { %v326_v9 = vand.u32 (!%p174_p3), 4294901760, %v325_v6 }
   0xe   : > { %s993_s12 = smov (!%p214_p4, %s906_s12), 1  ;;  %v327_v12 = vsub.f32 %v325_v6, %v326_v9 }
   0xf   : > { %s851_s20 = sshll.u32 %s993_s12, 4 }
  0x10   : > { %s225_s23 = scalar_lea.vmem %s984_s0, %s851_s20  ;;  %v328_v15 = vand.u32 4294901760, %v327_v12  ;;  %s239_s26 = scalar_lea.vmem %s987_s3, %s851_s20 }
  0x11   : > { %v242_v7 = vld [vmem:[%s225_s23 + $0x8] sm:$0xff]  ;;  %v241_v8 = vld [vmem:[%s225_s23] sm:$0xff] }
  0x12   : > { %v257_v10 = vand.u32 4294901760, %v242_v7  ;;  %v259_v11 = vand.u32 4294901760, %v241_v8 }
  0x14   : > { %495 = vmatprep.subr.mxu0 %v257_v10  ;;  %258 = vmatprep.subr.mxu1 %v257_v10  ;;  %v342_v13 = vsub.f32 %v241_v8, %v259_v11  ;;  %v336_v14 = vsub.f32 %v242_v7, %v257_v10 }
  0x15   : > { %497 = vmatpush1.msra.mxu0 %v259_v11  ;;  %260 = vmatpush1.msra.mxu1 %v259_v11 }
  0x16   : > { %564 = vmatmul.mubr.f32.vlgmr.msra.gmra.mrb[0].mxu0 %v326_v9  ;;  %v337_v16 = vand.u32 4294901760, %v336_v14  ;;  %v343_v17 = vand.u32 4294901760, %v342_v13  ;;  %329 = vmatmul.mubr.f32.vlgmr.msra.gmra.mrb[0].mxu1 %v328_v15 }
  0x17   : > { %640 = vmatprep.mubr.f32.mxu0 %v916_v2  ;;  %409 = vmatprep.mubr.f32.mxu1 %v916_v2 }
  0x18   : > { %v338_v18 = vsub.f32 %v336_v14, %v337_v16  ;;  %573 = vmatprep.subr.mxu0 %v337_v16  ;;  %v344_v19 = vsub.f32 %v342_v13, %v343_v17 }
  0x19   : > { %577 = vmatpush1.msra.mxu0 %v343_v17 }
  0x1a   : > { %v339_v20 = vand.u32 4294901760, %v338_v18  ;;  %v345_v21 = vand.u32 4294901760, %v344_v19  ;;  %649 = vmatprep.subr.mxu0 %v257_v10 }
  0x1c   : > { %340 = vmatprep.subr.mxu1 %v339_v20 }
  0x1d   : > { %346 = vmatpush1.msra.mxu1 %v345_v21 }
  0x1e   : > { %642 = vmatmul.mubr.f32.vlgmr.msra.gmra.mrb[0].mxu0 %v324_v4  ;;  %419 = vmatprep.subr.mxu1 %v336_v14 }
  0x1f   : > { %411 = vmatmul.mubr.f32.vlgmr.msra.gmra.mrb[0].mxu1 %v324_v4  ;;  %651 = vmatpush1.msra.mxu0 %v259_v11 }
  0x20   : > { %422 = vmatpush1.msra.mxu1 %v342_v13  ;;  %714 = vmatprep.mubr.f32.mxu0 %v916_v2 }
  0x21   : > { %485 = vmatprep.mubr.f32.mxu1 %v916_v2 }
  0x26   : > { %716 = vmatmul.mubr.f32.vlgmr.msra.gmra.mrb[0].mxu0 %v324_v4 }
  0x27   : > { %488 = vmatmul.mubr.f32.vlgmr.msra.gmra.mrb[0].mxu1 %v325_v6 }
  0x88   : > { %v251_v22 = vpop.permute.xlu0 %250 }
  0xf9   : > { %v717_v23 = vpop.f32.mrb[0].mxu0 }
  0xfa   : > { %v489_v24 = vpop.f32.mrb[0].mxu1  ;;  %v719_v25 = vpop.f32.mrb[1].mxu0 }
  0xfb   : > { %v853_v26 = vadd.f32 %v489_v24, %v251_v22  ;;  %v491_v27 = vpop.f32.mrb[1].mxu1 }
  0xfc   : > { %v855_v28 = vadd.f32 %v491_v27, %v251_v22 }
  0xfd   : > { %v854_v29 = vadd.f32 %v853_v26, %v717_v23 }
  0xfe   : > { %v856_v30 = vadd.f32 %v855_v28, %v719_v25 }
  0xff   : > { %722 = vst [vmem:[%s239_s26] sm:$0xff] %v854_v29 }
 0x100   : > { %723 = vst [vmem:[%s239_s26 + $0x8] sm:$0xff] %v856_v30 }
 0x101 PF: > { %s13_s14 = sadd.s32 1, %s914_s14   ;;  %s988_s12 = smov %s910_s13 }
 0x102   : > { %p10_p5 = scmp.ge.s32.totalorder %s13_s14, 4   ;;  %s989_s13 = smov %s991_s15 }
 0x104   :  { %12 = sbr.rel (!%p10_p5) target bundleno = 2 (0x2), region = 64 }

</bundles_post_ra>
